<compile_context>
chip_gen: v7x
topology: tpu7x:2x2x1
jax: 0.10.0
libtpu: 0.0.40
codegen_flags: <defaults>
</compile_context>

<pallas_src>
import functools

import numpy as np
import jax
import jax.numpy as jnp
from jax import lax
from jax.experimental import pallas as pl
from jax.experimental.pallas import tpu as pltpu


_LANES = 128
_SUBLANES = 8
_MAX_TILE_ROWS = 512   # 512*128*4 B = 256 KiB per input block; 2 inputs x 2 buffers ≈ 1 MiB VMEM
_UNROLL_BINS = 32      # fully unroll the per-edge loop when the bin count is small


def _ece_sums_kernel(edges_ref, conf_ref, acc_ref, sums_ref, *,
                     n_valid, tile_elems, n_edges):
    """Accumulates cumulative per-edge sums over one (TILE_R, 128) tile.

    edges_ref : SMEM (n_edges,)     float32   bin edges (n_edges = n_bins + 1)
    conf_ref  : VMEM (TILE_R, 128)  float32   confidence tile
    acc_ref   : VMEM (TILE_R, 128)  float32   accuracy tile
    sums_ref  : SMEM (3, n_edges)   float32   cross-tile accumulator / output
    """
    t = pl.program_id(0)
    n_bins = n_edges - 1
    zero = jnp.float32(0.0)

    @pl.when(t == 0)
    def _init():
        def zero_body(j, carry):
            sums_ref[0, j] = zero
            sums_ref[1, j] = zero
            sums_ref[2, j] = zero
            return carry
        lax.fori_loop(0, n_edges, zero_body, 0)

    conf = conf_ref[...]
    acc = acc_ref[...]

    # Mask the ragged tail by global element index (pad values are irrelevant).
    rows = lax.broadcasted_iota(jnp.int32, conf.shape, 0)
    cols = lax.broadcasted_iota(jnp.int32, conf.shape, 1)
    gidx = t * tile_elems + rows * _LANES + cols
    validf = (gidx < n_valid).astype(jnp.float32)

    # Edge index 0: totals over all valid elements (bin 0's lower side is
    # inclusive of edges[0] == min(confidence), so this covers it exactly).
    sums_ref[0, 0] += jnp.sum(validf)
    sums_ref[1, 0] += jnp.sum(validf * conf)
    sums_ref[2, 0] += jnp.sum(validf * acc)

    def edge_update(j, hi):
        gtv = (conf > hi).astype(jnp.float32) * validf   # single compare per edge
        sums_ref[0, j] += jnp.sum(gtv)
        sums_ref[1, j] += jnp.sum(gtv * conf)
        sums_ref[2, j] += jnp.sum(gtv * acc)

    if n_bins <= _UNROLL_BINS:
        # Static unroll: lets the scheduler co-issue adjacent edges.
        for j in range(1, n_edges):
            edge_update(j, edges_ref[j])
    else:
        def body(j, carry):
            edge_update(j, edges_ref[j])
            return carry
        lax.fori_loop(1, n_edges, body, 0)


def _bin_edges(confidence, num_bins, num_per_bin):
    """Reconstruction of the (undefined) Bin_edges helper from the reference."""
    n = confidence.shape[0]
    if num_bins is not None:
        lo = jnp.min(confidence)   # avoid O(N log N) sort on the fixed-bin path
        hi = jnp.max(confidence)
        edges = jnp.linspace(lo, hi, num_bins + 1)
    else:
        sorted_conf = jnp.sort(confidence)
        n_bins = int(np.ceil(n / num_per_bin))
        idx = np.minimum(np.arange(1, n_bins + 1) * num_per_bin, n) - 1
        edges = jnp.concatenate([sorted_conf[:1], sorted_conf[idx]])
    return edges.astype(jnp.float32)


def ece_pallas(confidence, accuracy, num_bins=None, num_per_bin=50):
    """Pallas implementation of ECE.forward(confidence, accuracy)."""
    confidence = confidence.astype(jnp.float32)
    accuracy = accuracy.astype(jnp.float32)   # accuracy.float() in the reference
    n = confidence.shape[0]

    edges = _bin_edges(confidence, num_bins, num_per_bin)
    n_edges = int(edges.shape[0])

    # The torch code sorts confidence and permutes accuracy identically; the
    # binned sums are permutation-invariant, so the kernel consumes the
    # unsorted arrays directly (sorting only matters for edge selection).

    # --- tiling: (rows, 128) view, streamed as (TILE_R, 128) row tiles ---
    rows_needed = max(1, -(-n // _LANES))
    if rows_needed >= _MAX_TILE_ROWS:
        tile_rows = _MAX_TILE_ROWS
    else:
        tile_rows = -(-rows_needed // _SUBLANES) * _SUBLANES
    num_tiles = -(-rows_needed // tile_rows)
    rows_padded = num_tiles * tile_rows
    pad = rows_padded * _LANES - n
    # Pad is a no-op copy when n is already tile-aligned; the tail is masked by
    # index inside the kernel, so the pad value is irrelevant.
    conf_tiled = jnp.pad(confidence, (0, pad)).reshape(rows_padded, _LANES)
    acc_tiled = jnp.pad(accuracy, (0, pad)).reshape(rows_padded, _LANES)

    kernel = functools.partial(
        _ece_sums_kernel,
        n_valid=n, tile_elems=tile_rows * _LANES, n_edges=n_edges)

    sums = pl.pallas_call(
        kernel,
        out_shape=jax.ShapeDtypeStruct((3, n_edges), jnp.float32),
        grid=(num_tiles,),
        in_specs=[
            pl.BlockSpec(memory_space=pltpu.MemorySpace.SMEM),      # bin edges
            pl.BlockSpec((tile_rows, _LANES), lambda i: (i, 0)),    # confidence
            pl.BlockSpec((tile_rows, _LANES), lambda i: (i, 0)),    # accuracy
        ],
        out_specs=pl.BlockSpec(memory_space=pltpu.MemorySpace.SMEM),
        compiler_params=pltpu.CompilerParams(
            dimension_semantics=("arbitrary",)),  # sequential reduction over tiles
    )(edges, conf_tiled, acc_tiled)

    # --- tiny epilogue on the (3, n_bins + 1) table ---
    cnt = sums[0, :-1] - sums[0, 1:]
    csum = sums[1, :-1] - sums[1, 1:]
    asum = sums[2, :-1] - sums[2, 1:]
    safe = jnp.maximum(cnt, 1.0)
    ece = jnp.sum(
        jnp.where(cnt > 0.0,
                  (cnt / n) * jnp.abs(asum / safe - csum / safe),
                  0.0))
    return ece


def _ece_reference_np(confidence, accuracy, edges):
    """NumPy reference mirroring the torch forward pass for given bin edges."""
    conf = np.asarray(confidence, dtype=np.float64)
    acc = np.asarray(accuracy, dtype=np.float64)
    edges = np.asarray(edges, dtype=np.float64)
    n = conf.shape[0]
    total = 0.0
    for i in range(len(edges) - 1):
        if i == 0:
            mask = (conf >= edges[i]) & (conf <= edges[i + 1])
        else:
            mask = (conf > edges[i]) & (conf <= edges[i + 1])
        c = mask.sum()
        if c > 0:
            total += (c / n) * abs(acc[mask].mean() - conf[mask].mean())
    return np.float32(total)


if __name__ == "__main__":
    key = jax.random.PRNGKey(0)
    k_conf, k_acc = jax.random.split(key)

    n = 400  # -> 8 adaptive bins with num_per_bin=50
    confidence = jax.random.uniform(k_conf, (n,), dtype=jnp.float32)
    accuracy = (jax.random.uniform(k_acc, (n,)) < confidence).astype(jnp.float32)

    # Adaptive (equal-frequency) bins — the module's default path.
    ece_adaptive = jax.block_until_ready(
        ece_pallas(confidence, accuracy, num_bins=None, num_per_bin=50))
    edges_adaptive = _bin_edges(confidence.astype(jnp.float32), None, 50)
    ref_adaptive = _ece_reference_np(np.asarray(confidence), np.asarray(accuracy),
                                     np.asarray(edges_adaptive))
    np.testing.assert_allclose(np.asarray(ece_adaptive), ref_adaptive,
                               rtol=1e-4, atol=1e-5)

    # Fixed number of uniform bins.
    ece_fixed = jax.block_until_ready(
        ece_pallas(confidence, accuracy, num_bins=10))
    edges_fixed = _bin_edges(confidence.astype(jnp.float32), 10, 50)
    ref_fixed = _ece_reference_np(np.asarray(confidence), np.asarray(accuracy),
                                  np.asarray(edges_fixed))
    np.testing.assert_allclose(np.asarray(ece_fixed), ref_fixed,
                               rtol=1e-4, atol=1e-5)

    print("KERNEL_OK")
</pallas_src>

<mosaic_0001>
module attributes {stable_mosaic.version = 11 : i64} {
  func.func @_ece_sums_kernel(%arg0: i32, %arg1: memref<9xf32, #tpu.memory_space<smem>>, %arg2: memref<8x128xf32, #tpu.memory_space<vmem>>, %arg3: memref<8x128xf32, #tpu.memory_space<vmem>>, %arg4: memref<3x9xf32, #tpu.memory_space<smem>>) attributes {dimension_semantics = [#tpu.dimension_semantics<arbitrary>], iteration_bounds = array<i64: 1>, scalar_prefetch = 0 : i64, scratch_operands = 0 : i64, tpu.core_type = #tpu.core_type<tc>, window_params = [{transform_indices = @transform_0, window_bounds = array<i64: 9>}, {transform_indices = @transform_1, window_bounds = array<i64: 8, 128>}, {transform_indices = @transform_2, window_bounds = array<i64: 8, 128>}, {transform_indices = @transform_3, window_bounds = array<i64: 3, 9>}]} {
    %c0_i32 = arith.constant 0 : i32
    %0 = arith.cmpi eq, %arg0, %c0_i32 : i32
    %1 = arith.extui %0 : i1 to i32
    %cst = arith.constant 0.000000e+00 : f32
    %c0_i32_0 = arith.constant 0 : i32
    %2 = arith.cmpi ne, %1, %c0_i32_0 : i32
    scf.if %2 {
      %c0_i32_139 = arith.constant 0 : i32
      %c9_i32 = arith.constant 9 : i32
      %272 = arith.addi %c0_i32_139, %c9_i32 : i32
      %c1_i32 = arith.constant 1 : i32
      scf.for %arg5 = %c0_i32_139 to %272 step %c1_i32  : i32 {
        %c0_141 = arith.constant 0 : index
        %273 = arith.index_cast %arg5 : i32 to index
        %274 = memref.load %arg4[%c0_141, %273] : memref<3x9xf32, #tpu.memory_space<smem>>
        memref.store %cst, %arg4[%c0_141, %273] : memref<3x9xf32, #tpu.memory_space<smem>>
        %c1_142 = arith.constant 1 : index
        %275 = arith.index_cast %arg5 : i32 to index
        %276 = memref.load %arg4[%c1_142, %275] : memref<3x9xf32, #tpu.memory_space<smem>>
        memref.store %cst, %arg4[%c1_142, %275] : memref<3x9xf32, #tpu.memory_space<smem>>
        %c2_143 = arith.constant 2 : index
        %277 = arith.index_cast %arg5 : i32 to index
        %278 = memref.load %arg4[%c2_143, %277] : memref<3x9xf32, #tpu.memory_space<smem>>
        memref.store %cst, %arg4[%c2_143, %277] : memref<3x9xf32, #tpu.memory_space<smem>>
      }
      %c9_i32_140 = arith.constant 9 : i32
    } else {
    }
    %c0 = arith.constant 0 : index
    %c0_1 = arith.constant 0 : index
    %3 = vector.load %arg2[%c0, %c0_1] : memref<8x128xf32, #tpu.memory_space<vmem>>, vector<8x128xf32>
    %c0_2 = arith.constant 0 : index
    %c0_3 = arith.constant 0 : index
    %4 = vector.load %arg3[%c0_2, %c0_3] : memref<8x128xf32, #tpu.memory_space<vmem>>, vector<8x128xf32>
    %5 = tpu.iota {dimensions = array<i32: 0>} : vector<8x128xi32>
    %6 = tpu.iota {dimensions = array<i32: 1>} : vector<8x128xi32>
    %c1024_i32 = arith.constant 1024 : i32
    %7 = arith.muli %arg0, %c1024_i32 : i32
    %c128_i32 = arith.constant 128 : i32
    %8 = vector.broadcast %c128_i32 : i32 to vector<8x128xi32>
    %9 = arith.muli %5, %8 : vector<8x128xi32>
    %10 = vector.broadcast %7 : i32 to vector<8x128xi32>
    %11 = arith.addi %10, %9 : vector<8x128xi32>
    %12 = arith.addi %11, %6 : vector<8x128xi32>
    %c400_i32 = arith.constant 400 : i32
    %13 = vector.broadcast %c400_i32 : i32 to vector<8x128xi32>
    %14 = arith.cmpi slt, %12, %13 : vector<8x128xi32>
    %15 = arith.extui %14 : vector<8x128xi1> to vector<8x128xi32>
    %16 = arith.sitofp %15 : vector<8x128xi32> to vector<8x128xf32>
    %c0_4 = arith.constant 0 : index
    %c0_5 = arith.constant 0 : index
    %17 = memref.load %arg4[%c0_4, %c0_5] : memref<3x9xf32, #tpu.memory_space<smem>>
    %18 = vector.shape_cast %16 : vector<8x128xf32> to vector<1x8x128xf32>
    %cst_6 = arith.constant dense<0.000000e+00> : vector<1xf32>
    %19 = vector.multi_reduction <add>, %18, %cst_6 [1, 2] : vector<1x8x128xf32> to vector<1xf32>
    %20 = vector.shape_cast %19 : vector<1xf32> to vector<1x1x1xf32>
    %21 = vector.extract %20[0, 0, 0] : f32 from vector<1x1x1xf32>
    %22 = arith.addf %17, %21 : f32
    %c0_7 = arith.constant 0 : index
    %c0_8 = arith.constant 0 : index
    %23 = memref.load %arg4[%c0_7, %c0_8] : memref<3x9xf32, #tpu.memory_space<smem>>
    memref.store %22, %arg4[%c0_7, %c0_8] : memref<3x9xf32, #tpu.memory_space<smem>>
    %c1 = arith.constant 1 : index
    %c0_9 = arith.constant 0 : index
    %24 = memref.load %arg4[%c1, %c0_9] : memref<3x9xf32, #tpu.memory_space<smem>>
    %25 = arith.mulf %16, %3 : vector<8x128xf32>
    %26 = vector.shape_cast %25 : vector<8x128xf32> to vector<1x8x128xf32>
    %cst_10 = arith.constant dense<0.000000e+00> : vector<1xf32>
    %27 = vector.multi_reduction <add>, %26, %cst_10 [1, 2] : vector<1x8x128xf32> to vector<1xf32>
    %28 = vector.shape_cast %27 : vector<1xf32> to vector<1x1x1xf32>
    %29 = vector.extract %28[0, 0, 0] : f32 from vector<1x1x1xf32>
    %30 = arith.addf %24, %29 : f32
    %c1_11 = arith.constant 1 : index
    %c0_12 = arith.constant 0 : index
    %31 = memref.load %arg4[%c1_11, %c0_12] : memref<3x9xf32, #tpu.memory_space<smem>>
    memref.store %30, %arg4[%c1_11, %c0_12] : memref<3x9xf32, #tpu.memory_space<smem>>
    %c2 = arith.constant 2 : index
    %c0_13 = arith.constant 0 : index
    %32 = memref.load %arg4[%c2, %c0_13] : memref<3x9xf32, #tpu.memory_space<smem>>
    %33 = arith.mulf %16, %4 : vector<8x128xf32>
    %34 = vector.shape_cast %33 : vector<8x128xf32> to vector<1x8x128xf32>
    %cst_14 = arith.constant dense<0.000000e+00> : vector<1xf32>
    %35 = vector.multi_reduction <add>, %34, %cst_14 [1, 2] : vector<1x8x128xf32> to vector<1xf32>
    %36 = vector.shape_cast %35 : vector<1xf32> to vector<1x1x1xf32>
    %37 = vector.extract %36[0, 0, 0] : f32 from vector<1x1x1xf32>
    %38 = arith.addf %32, %37 : f32
    %c2_15 = arith.constant 2 : index
    %c0_16 = arith.constant 0 : index
    %39 = memref.load %arg4[%c2_15, %c0_16] : memref<3x9xf32, #tpu.memory_space<smem>>
    memref.store %38, %arg4[%c2_15, %c0_16] : memref<3x9xf32, #tpu.memory_space<smem>>
    %c1_17 = arith.constant 1 : index
    %40 = memref.load %arg1[%c1_17] : memref<9xf32, #tpu.memory_space<smem>>
    %41 = vector.broadcast %40 : f32 to vector<8x128xf32>
    %42 = arith.cmpf ogt, %3, %41 : vector<8x128xf32>
    %43 = arith.extui %42 : vector<8x128xi1> to vector<8x128xi32>
    %44 = arith.sitofp %43 : vector<8x128xi32> to vector<8x128xf32>
    %45 = arith.mulf %44, %16 : vector<8x128xf32>
    %c0_18 = arith.constant 0 : index
    %c1_19 = arith.constant 1 : index
    %46 = memref.load %arg4[%c0_18, %c1_19] : memref<3x9xf32, #tpu.memory_space<smem>>
    %47 = vector.shape_cast %45 : vector<8x128xf32> to vector<1x8x128xf32>
    %cst_20 = arith.constant dense<0.000000e+00> : vector<1xf32>
    %48 = vector.multi_reduction <add>, %47, %cst_20 [1, 2] : vector<1x8x128xf32> to vector<1xf32>
    %49 = vector.shape_cast %48 : vector<1xf32> to vector<1x1x1xf32>
    %50 = vector.extract %49[0, 0, 0] : f32 from vector<1x1x1xf32>
    %51 = arith.addf %46, %50 : f32
    %c0_21 = arith.constant 0 : index
    %c1_22 = arith.constant 1 : index
    %52 = memref.load %arg4[%c0_21, %c1_22] : memref<3x9xf32, #tpu.memory_space<smem>>
    memref.store %51, %arg4[%c0_21, %c1_22] : memref<3x9xf32, #tpu.memory_space<smem>>
    %c1_23 = arith.constant 1 : index
    %c1_24 = arith.constant 1 : index
    %53 = memref.load %arg4[%c1_23, %c1_24] : memref<3x9xf32, #tpu.memory_space<smem>>
    %54 = arith.mulf %45, %3 : vector<8x128xf32>
    %55 = vector.shape_cast %54 : vector<8x128xf32> to vector<1x8x128xf32>
    %cst_25 = arith.constant dense<0.000000e+00> : vector<1xf32>
    %56 = vector.multi_reduction <add>, %55, %cst_25 [1, 2] : vector<1x8x128xf32> to vector<1xf32>
    %57 = vector.shape_cast %56 : vector<1xf32> to vector<1x1x1xf32>
    %58 = vector.extract %57[0, 0, 0] : f32 from vector<1x1x1xf32>
    %59 = arith.addf %53, %58 : f32
    %c1_26 = arith.constant 1 : index
    %c1_27 = arith.constant 1 : index
    %60 = memref.load %arg4[%c1_26, %c1_27] : memref<3x9xf32, #tpu.memory_space<smem>>
    memref.store %59, %arg4[%c1_26, %c1_27] : memref<3x9xf32, #tpu.memory_space<smem>>
    %c2_28 = arith.constant 2 : index
    %c1_29 = arith.constant 1 : index
    %61 = memref.load %arg4[%c2_28, %c1_29] : memref<3x9xf32, #tpu.memory_space<smem>>
    %62 = arith.mulf %45, %4 : vector<8x128xf32>
    %63 = vector.shape_cast %62 : vector<8x128xf32> to vector<1x8x128xf32>
    %cst_30 = arith.constant dense<0.000000e+00> : vector<1xf32>
    %64 = vector.multi_reduction <add>, %63, %cst_30 [1, 2] : vector<1x8x128xf32> to vector<1xf32>
    %65 = vector.shape_cast %64 : vector<1xf32> to vector<1x1x1xf32>
    %66 = vector.extract %65[0, 0, 0] : f32 from vector<1x1x1xf32>
    %67 = arith.addf %61, %66 : f32
    %c2_31 = arith.constant 2 : index
    %c1_32 = arith.constant 1 : index
    %68 = memref.load %arg4[%c2_31, %c1_32] : memref<3x9xf32, #tpu.memory_space<smem>>
    memref.store %67, %arg4[%c2_31, %c1_32] : memref<3x9xf32, #tpu.memory_space<smem>>
    %c2_33 = arith.constant 2 : index
    %69 = memref.load %arg1[%c2_33] : memref<9xf32, #tpu.memory_space<smem>>
    %70 = vector.broadcast %69 : f32 to vector<8x128xf32>
    %71 = arith.cmpf ogt, %3, %70 : vector<8x128xf32>
    %72 = arith.extui %71 : vector<8x128xi1> to vector<8x128xi32>
    %73 = arith.sitofp %72 : vector<8x128xi32> to vector<8x128xf32>
    %74 = arith.mulf %73, %16 : vector<8x128xf32>
    %c0_34 = arith.constant 0 : index
    %c2_35 = arith.constant 2 : index
    %75 = memref.load %arg4[%c0_34, %c2_35] : memref<3x9xf32, #tpu.memory_space<smem>>
    %76 = vector.shape_cast %74 : vector<8x128xf32> to vector<1x8x128xf32>
    %cst_36 = arith.constant dense<0.000000e+00> : vector<1xf32>
    %77 = vector.multi_reduction <add>, %76, %cst_36 [1, 2] : vector<1x8x128xf32> to vector<1xf32>
    %78 = vector.shape_cast %77 : vector<1xf32> to vector<1x1x1xf32>
    %79 = vector.extract %78[0, 0, 0] : f32 from vector<1x1x1xf32>
    %80 = arith.addf %75, %79 : f32
    %c0_37 = arith.constant 0 : index
    %c2_38 = arith.constant 2 : index
    %81 = memref.load %arg4[%c0_37, %c2_38] : memref<3x9xf32, #tpu.memory_space<smem>>
    memref.store %80, %arg4[%c0_37, %c2_38] : memref<3x9xf32, #tpu.memory_space<smem>>
    %c1_39 = arith.constant 1 : index
    %c2_40 = arith.constant 2 : index
    %82 = memref.load %arg4[%c1_39, %c2_40] : memref<3x9xf32, #tpu.memory_space<smem>>
    %83 = arith.mulf %74, %3 : vector<8x128xf32>
    %84 = vector.shape_cast %83 : vector<8x128xf32> to vector<1x8x128xf32>
    %cst_41 = arith.constant dense<0.000000e+00> : vector<1xf32>
    %85 = vector.multi_reduction <add>, %84, %cst_41 [1, 2] : vector<1x8x128xf32> to vector<1xf32>
    %86 = vector.shape_cast %85 : vector<1xf32> to vector<1x1x1xf32>
    %87 = vector.extract %86[0, 0, 0] : f32 from vector<1x1x1xf32>
    %88 = arith.addf %82, %87 : f32
    %c1_42 = arith.constant 1 : index
    %c2_43 = arith.constant 2 : index
    %89 = memref.load %arg4[%c1_42, %c2_43] : memref<3x9xf32, #tpu.memory_space<smem>>
    memref.store %88, %arg4[%c1_42, %c2_43] : memref<3x9xf32, #tpu.memory_space<smem>>
    %c2_44 = arith.constant 2 : index
    %c2_45 = arith.constant 2 : index
    %90 = memref.load %arg4[%c2_44, %c2_45] : memref<3x9xf32, #tpu.memory_space<smem>>
    %91 = arith.mulf %74, %4 : vector<8x128xf32>
    %92 = vector.shape_cast %91 : vector<8x128xf32> to vector<1x8x128xf32>
    %cst_46 = arith.constant dense<0.000000e+00> : vector<1xf32>
    %93 = vector.multi_reduction <add>, %92, %cst_46 [1, 2] : vector<1x8x128xf32> to vector<1xf32>
    %94 = vector.shape_cast %93 : vector<1xf32> to vector<1x1x1xf32>
    %95 = vector.extract %94[0, 0, 0] : f32 from vector<1x1x1xf32>
    %96 = arith.addf %90, %95 : f32
    %c2_47 = arith.constant 2 : index
    %c2_48 = arith.constant 2 : index
    %97 = memref.load %arg4[%c2_47, %c2_48] : memref<3x9xf32, #tpu.memory_space<smem>>
    memref.store %96, %arg4[%c2_47, %c2_48] : memref<3x9xf32, #tpu.memory_space<smem>>
    %c3 = arith.constant 3 : index
    %98 = memref.load %arg1[%c3] : memref<9xf32, #tpu.memory_space<smem>>
    %99 = vector.broadcast %98 : f32 to vector<8x128xf32>
    %100 = arith.cmpf ogt, %3, %99 : vector<8x128xf32>
    %101 = arith.extui %100 : vector<8x128xi1> to vector<8x128xi32>
    %102 = arith.sitofp %101 : vector<8x128xi32> to vector<8x128xf32>
    %103 = arith.mulf %102, %16 : vector<8x128xf32>
    %c0_49 = arith.constant 0 : index
    %c3_50 = arith.constant 3 : index
    %104 = memref.load %arg4[%c0_49, %c3_50] : memref<3x9xf32, #tpu.memory_space<smem>>
    %105 = vector.shape_cast %103 : vector<8x128xf32> to vector<1x8x128xf32>
    %cst_51 = arith.constant dense<0.000000e+00> : vector<1xf32>
    %106 = vector.multi_reduction <add>, %105, %cst_51 [1, 2] : vector<1x8x128xf32> to vector<1xf32>
    %107 = vector.shape_cast %106 : vector<1xf32> to vector<1x1x1xf32>
    %108 = vector.extract %107[0, 0, 0] : f32 from vector<1x1x1xf32>
    %109 = arith.addf %104, %108 : f32
    %c0_52 = arith.constant 0 : index
    %c3_53 = arith.constant 3 : index
    %110 = memref.load %arg4[%c0_52, %c3_53] : memref<3x9xf32, #tpu.memory_space<smem>>
    memref.store %109, %arg4[%c0_52, %c3_53] : memref<3x9xf32, #tpu.memory_space<smem>>
    %c1_54 = arith.constant 1 : index
    %c3_55 = arith.constant 3 : index
    %111 = memref.load %arg4[%c1_54, %c3_55] : memref<3x9xf32, #tpu.memory_space<smem>>
    %112 = arith.mulf %103, %3 : vector<8x128xf32>
    %113 = vector.shape_cast %112 : vector<8x128xf32> to vector<1x8x128xf32>
    %cst_56 = arith.constant dense<0.000000e+00> : vector<1xf32>
    %114 = vector.multi_reduction <add>, %113, %cst_56 [1, 2] : vector<1x8x128xf32> to vector<1xf32>
    %115 = vector.shape_cast %114 : vector<1xf32> to vector<1x1x1xf32>
    %116 = vector.extract %115[0, 0, 0] : f32 from vector<1x1x1xf32>
    %117 = arith.addf %111, %116 : f32
    %c1_57 = arith.constant 1 : index
    %c3_58 = arith.constant 3 : index
    %118 = memref.load %arg4[%c1_57, %c3_58] : memref<3x9xf32, #tpu.memory_space<smem>>
    memref.store %117, %arg4[%c1_57, %c3_58] : memref<3x9xf32, #tpu.memory_space<smem>>
    %c2_59 = arith.constant 2 : index
    %c3_60 = arith.constant 3 : index
    %119 = memref.load %arg4[%c2_59, %c3_60] : memref<3x9xf32, #tpu.memory_space<smem>>
    %120 = arith.mulf %103, %4 : vector<8x128xf32>
    %121 = vector.shape_cast %120 : vector<8x128xf32> to vector<1x8x128xf32>
    %cst_61 = arith.constant dense<0.000000e+00> : vector<1xf32>
    %122 = vector.multi_reduction <add>, %121, %cst_61 [1, 2] : vector<1x8x128xf32> to vector<1xf32>
    %123 = vector.shape_cast %122 : vector<1xf32> to vector<1x1x1xf32>
    %124 = vector.extract %123[0, 0, 0] : f32 from vector<1x1x1xf32>
    %125 = arith.addf %119, %124 : f32
    %c2_62 = arith.constant 2 : index
    %c3_63 = arith.constant 3 : index
    %126 = memref.load %arg4[%c2_62, %c3_63] : memref<3x9xf32, #tpu.memory_space<smem>>
    memref.store %125, %arg4[%c2_62, %c3_63] : memref<3x9xf32, #tpu.memory_space<smem>>
    %c4 = arith.constant 4 : index
    %127 = memref.load %arg1[%c4] : memref<9xf32, #tpu.memory_space<smem>>
    %128 = vector.broadcast %127 : f32 to vector<8x128xf32>
    %129 = arith.cmpf ogt, %3, %128 : vector<8x128xf32>
    %130 = arith.extui %129 : vector<8x128xi1> to vector<8x128xi32>
    %131 = arith.sitofp %130 : vector<8x128xi32> to vector<8x128xf32>
    %132 = arith.mulf %131, %16 : vector<8x128xf32>
    %c0_64 = arith.constant 0 : index
    %c4_65 = arith.constant 4 : index
    %133 = memref.load %arg4[%c0_64, %c4_65] : memref<3x9xf32, #tpu.memory_space<smem>>
    %134 = vector.shape_cast %132 : vector<8x128xf32> to vector<1x8x128xf32>
    %cst_66 = arith.constant dense<0.000000e+00> : vector<1xf32>
    %135 = vector.multi_reduction <add>, %134, %cst_66 [1, 2] : vector<1x8x128xf32> to vector<1xf32>
    %136 = vector.shape_cast %135 : vector<1xf32> to vector<1x1x1xf32>
    %137 = vector.extract %136[0, 0, 0] : f32 from vector<1x1x1xf32>
    %138 = arith.addf %133, %137 : f32
    %c0_67 = arith.constant 0 : index
    %c4_68 = arith.constant 4 : index
    %139 = memref.load %arg4[%c0_67, %c4_68] : memref<3x9xf32, #tpu.memory_space<smem>>
    memref.store %138, %arg4[%c0_67, %c4_68] : memref<3x9xf32, #tpu.memory_space<smem>>
    %c1_69 = arith.constant 1 : index
    %c4_70 = arith.constant 4 : index
    %140 = memref.load %arg4[%c1_69, %c4_70] : memref<3x9xf32, #tpu.memory_space<smem>>
    %141 = arith.mulf %132, %3 : vector<8x128xf32>
    %142 = vector.shape_cast %141 : vector<8x128xf32> to vector<1x8x128xf32>
    %cst_71 = arith.constant dense<0.000000e+00> : vector<1xf32>
    %143 = vector.multi_reduction <add>, %142, %cst_71 [1, 2] : vector<1x8x128xf32> to vector<1xf32>
    %144 = vector.shape_cast %143 : vector<1xf32> to vector<1x1x1xf32>
    %145 = vector.extract %144[0, 0, 0] : f32 from vector<1x1x1xf32>
    %146 = arith.addf %140, %145 : f32
    %c1_72 = arith.constant 1 : index
    %c4_73 = arith.constant 4 : index
    %147 = memref.load %arg4[%c1_72, %c4_73] : memref<3x9xf32, #tpu.memory_space<smem>>
    memref.store %146, %arg4[%c1_72, %c4_73] : memref<3x9xf32, #tpu.memory_space<smem>>
    %c2_74 = arith.constant 2 : index
    %c4_75 = arith.constant 4 : index
    %148 = memref.load %arg4[%c2_74, %c4_75] : memref<3x9xf32, #tpu.memory_space<smem>>
    %149 = arith.mulf %132, %4 : vector<8x128xf32>
    %150 = vector.shape_cast %149 : vector<8x128xf32> to vector<1x8x128xf32>
    %cst_76 = arith.constant dense<0.000000e+00> : vector<1xf32>
    %151 = vector.multi_reduction <add>, %150, %cst_76 [1, 2] : vector<1x8x128xf32> to vector<1xf32>
    %152 = vector.shape_cast %151 : vector<1xf32> to vector<1x1x1xf32>
    %153 = vector.extract %152[0, 0, 0] : f32 from vector<1x1x1xf32>
    %154 = arith.addf %148, %153 : f32
    %c2_77 = arith.constant 2 : index
    %c4_78 = arith.constant 4 : index
    %155 = memref.load %arg4[%c2_77, %c4_78] : memref<3x9xf32, #tpu.memory_space<smem>>
    memref.store %154, %arg4[%c2_77, %c4_78] : memref<3x9xf32, #tpu.memory_space<smem>>
    %c5 = arith.constant 5 : index
    %156 = memref.load %arg1[%c5] : memref<9xf32, #tpu.memory_space<smem>>
    %157 = vector.broadcast %156 : f32 to vector<8x128xf32>
    %158 = arith.cmpf ogt, %3, %157 : vector<8x128xf32>
    %159 = arith.extui %158 : vector<8x128xi1> to vector<8x128xi32>
    %160 = arith.sitofp %159 : vector<8x128xi32> to vector<8x128xf32>
    %161 = arith.mulf %160, %16 : vector<8x128xf32>
    %c0_79 = arith.constant 0 : index
    %c5_80 = arith.constant 5 : index
    %162 = memref.load %arg4[%c0_79, %c5_80] : memref<3x9xf32, #tpu.memory_space<smem>>
    %163 = vector.shape_cast %161 : vector<8x128xf32> to vector<1x8x128xf32>
    %cst_81 = arith.constant dense<0.000000e+00> : vector<1xf32>
    %164 = vector.multi_reduction <add>, %163, %cst_81 [1, 2] : vector<1x8x128xf32> to vector<1xf32>
    %165 = vector.shape_cast %164 : vector<1xf32> to vector<1x1x1xf32>
    %166 = vector.extract %165[0, 0, 0] : f32 from vector<1x1x1xf32>
    %167 = arith.addf %162, %166 : f32
    %c0_82 = arith.constant 0 : index
    %c5_83 = arith.constant 5 : index
    %168 = memref.load %arg4[%c0_82, %c5_83] : memref<3x9xf32, #tpu.memory_space<smem>>
    memref.store %167, %arg4[%c0_82, %c5_83] : memref<3x9xf32, #tpu.memory_space<smem>>
    %c1_84 = arith.constant 1 : index
    %c5_85 = arith.constant 5 : index
    %169 = memref.load %arg4[%c1_84, %c5_85] : memref<3x9xf32, #tpu.memory_space<smem>>
    %170 = arith.mulf %161, %3 : vector<8x128xf32>
    %171 = vector.shape_cast %170 : vector<8x128xf32> to vector<1x8x128xf32>
    %cst_86 = arith.constant dense<0.000000e+00> : vector<1xf32>
    %172 = vector.multi_reduction <add>, %171, %cst_86 [1, 2] : vector<1x8x128xf32> to vector<1xf32>
    %173 = vector.shape_cast %172 : vector<1xf32> to vector<1x1x1xf32>
    %174 = vector.extract %173[0, 0, 0] : f32 from vector<1x1x1xf32>
    %175 = arith.addf %169, %174 : f32
    %c1_87 = arith.constant 1 : index
    %c5_88 = arith.constant 5 : index
    %176 = memref.load %arg4[%c1_87, %c5_88] : memref<3x9xf32, #tpu.memory_space<smem>>
    memref.store %175, %arg4[%c1_87, %c5_88] : memref<3x9xf32, #tpu.memory_space<smem>>
    %c2_89 = arith.constant 2 : index
    %c5_90 = arith.constant 5 : index
    %177 = memref.load %arg4[%c2_89, %c5_90] : memref<3x9xf32, #tpu.memory_space<smem>>
    %178 = arith.mulf %161, %4 : vector<8x128xf32>
    %179 = vector.shape_cast %178 : vector<8x128xf32> to vector<1x8x128xf32>
    %cst_91 = arith.constant dense<0.000000e+00> : vector<1xf32>
    %180 = vector.multi_reduction <add>, %179, %cst_91 [1, 2] : vector<1x8x128xf32> to vector<1xf32>
    %181 = vector.shape_cast %180 : vector<1xf32> to vector<1x1x1xf32>
    %182 = vector.extract %181[0, 0, 0] : f32 from vector<1x1x1xf32>
    %183 = arith.addf %177, %182 : f32
    %c2_92 = arith.constant 2 : index
    %c5_93 = arith.constant 5 : index
    %184 = memref.load %arg4[%c2_92, %c5_93] : memref<3x9xf32, #tpu.memory_space<smem>>
    memref.store %183, %arg4[%c2_92, %c5_93] : memref<3x9xf32, #tpu.memory_space<smem>>
    %c6 = arith.constant 6 : index
    %185 = memref.load %arg1[%c6] : memref<9xf32, #tpu.memory_space<smem>>
    %186 = vector.broadcast %185 : f32 to vector<8x128xf32>
    %187 = arith.cmpf ogt, %3, %186 : vector<8x128xf32>
    %188 = arith.extui %187 : vector<8x128xi1> to vector<8x128xi32>
    %189 = arith.sitofp %188 : vector<8x128xi32> to vector<8x128xf32>
    %190 = arith.mulf %189, %16 : vector<8x128xf32>
    %c0_94 = arith.constant 0 : index
    %c6_95 = arith.constant 6 : index
    %191 = memref.load %arg4[%c0_94, %c6_95] : memref<3x9xf32, #tpu.memory_space<smem>>
    %192 = vector.shape_cast %190 : vector<8x128xf32> to vector<1x8x128xf32>
    %cst_96 = arith.constant dense<0.000000e+00> : vector<1xf32>
    %193 = vector.multi_reduction <add>, %192, %cst_96 [1, 2] : vector<1x8x128xf32> to vector<1xf32>
    %194 = vector.shape_cast %193 : vector<1xf32> to vector<1x1x1xf32>
    %195 = vector.extract %194[0, 0, 0] : f32 from vector<1x1x1xf32>
    %196 = arith.addf %191, %195 : f32
    %c0_97 = arith.constant 0 : index
    %c6_98 = arith.constant 6 : index
    %197 = memref.load %arg4[%c0_97, %c6_98] : memref<3x9xf32, #tpu.memory_space<smem>>
    memref.store %196, %arg4[%c0_97, %c6_98] : memref<3x9xf32, #tpu.memory_space<smem>>
    %c1_99 = arith.constant 1 : index
    %c6_100 = arith.constant 6 : index
    %198 = memref.load %arg4[%c1_99, %c6_100] : memref<3x9xf32, #tpu.memory_space<smem>>
    %199 = arith.mulf %190, %3 : vector<8x128xf32>
    %200 = vector.shape_cast %199 : vector<8x128xf32> to vector<1x8x128xf32>
    %cst_101 = arith.constant dense<0.000000e+00> : vector<1xf32>
    %201 = vector.multi_reduction <add>, %200, %cst_101 [1, 2] : vector<1x8x128xf32> to vector<1xf32>
    %202 = vector.shape_cast %201 : vector<1xf32> to vector<1x1x1xf32>
    %203 = vector.extract %202[0, 0, 0] : f32 from vector<1x1x1xf32>
    %204 = arith.addf %198, %203 : f32
    %c1_102 = arith.constant 1 : index
    %c6_103 = arith.constant 6 : index
    %205 = memref.load %arg4[%c1_102, %c6_103] : memref<3x9xf32, #tpu.memory_space<smem>>
    memref.store %204, %arg4[%c1_102, %c6_103] : memref<3x9xf32, #tpu.memory_space<smem>>
    %c2_104 = arith.constant 2 : index
    %c6_105 = arith.constant 6 : index
    %206 = memref.load %arg4[%c2_104, %c6_105] : memref<3x9xf32, #tpu.memory_space<smem>>
    %207 = arith.mulf %190, %4 : vector<8x128xf32>
    %208 = vector.shape_cast %207 : vector<8x128xf32> to vector<1x8x128xf32>
    %cst_106 = arith.constant dense<0.000000e+00> : vector<1xf32>
    %209 = vector.multi_reduction <add>, %208, %cst_106 [1, 2] : vector<1x8x128xf32> to vector<1xf32>
    %210 = vector.shape_cast %209 : vector<1xf32> to vector<1x1x1xf32>
    %211 = vector.extract %210[0, 0, 0] : f32 from vector<1x1x1xf32>
    %212 = arith.addf %206, %211 : f32
    %c2_107 = arith.constant 2 : index
    %c6_108 = arith.constant 6 : index
    %213 = memref.load %arg4[%c2_107, %c6_108] : memref<3x9xf32, #tpu.memory_space<smem>>
    memref.store %212, %arg4[%c2_107, %c6_108] : memref<3x9xf32, #tpu.memory_space<smem>>
    %c7 = arith.constant 7 : index
    %214 = memref.load %arg1[%c7] : memref<9xf32, #tpu.memory_space<smem>>
    %215 = vector.broadcast %214 : f32 to vector<8x128xf32>
    %216 = arith.cmpf ogt, %3, %215 : vector<8x128xf32>
    %217 = arith.extui %216 : vector<8x128xi1> to vector<8x128xi32>
    %218 = arith.sitofp %217 : vector<8x128xi32> to vector<8x128xf32>
    %219 = arith.mulf %218, %16 : vector<8x128xf32>
    %c0_109 = arith.constant 0 : index
    %c7_110 = arith.constant 7 : index
    %220 = memref.load %arg4[%c0_109, %c7_110] : memref<3x9xf32, #tpu.memory_space<smem>>
    %221 = vector.shape_cast %219 : vector<8x128xf32> to vector<1x8x128xf32>
    %cst_111 = arith.constant dense<0.000000e+00> : vector<1xf32>
    %222 = vector.multi_reduction <add>, %221, %cst_111 [1, 2] : vector<1x8x128xf32> to vector<1xf32>
    %223 = vector.shape_cast %222 : vector<1xf32> to vector<1x1x1xf32>
    %224 = vector.extract %223[0, 0, 0] : f32 from vector<1x1x1xf32>
    %225 = arith.addf %220, %224 : f32
    %c0_112 = arith.constant 0 : index
    %c7_113 = arith.constant 7 : index
    %226 = memref.load %arg4[%c0_112, %c7_113] : memref<3x9xf32, #tpu.memory_space<smem>>
    memref.store %225, %arg4[%c0_112, %c7_113] : memref<3x9xf32, #tpu.memory_space<smem>>
    %c1_114 = arith.constant 1 : index
    %c7_115 = arith.constant 7 : index
    %227 = memref.load %arg4[%c1_114, %c7_115] : memref<3x9xf32, #tpu.memory_space<smem>>
    %228 = arith.mulf %219, %3 : vector<8x128xf32>
    %229 = vector.shape_cast %228 : vector<8x128xf32> to vector<1x8x128xf32>
    %cst_116 = arith.constant dense<0.000000e+00> : vector<1xf32>
    %230 = vector.multi_reduction <add>, %229, %cst_116 [1, 2] : vector<1x8x128xf32> to vector<1xf32>
    %231 = vector.shape_cast %230 : vector<1xf32> to vector<1x1x1xf32>
    %232 = vector.extract %231[0, 0, 0] : f32 from vector<1x1x1xf32>
    %233 = arith.addf %227, %232 : f32
    %c1_117 = arith.constant 1 : index
    %c7_118 = arith.constant 7 : index
    %234 = memref.load %arg4[%c1_117, %c7_118] : memref<3x9xf32, #tpu.memory_space<smem>>
    memref.store %233, %arg4[%c1_117, %c7_118] : memref<3x9xf32, #tpu.memory_space<smem>>
    %c2_119 = arith.constant 2 : index
    %c7_120 = arith.constant 7 : index
    %235 = memref.load %arg4[%c2_119, %c7_120] : memref<3x9xf32, #tpu.memory_space<smem>>
    %236 = arith.mulf %219, %4 : vector<8x128xf32>
    %237 = vector.shape_cast %236 : vector<8x128xf32> to vector<1x8x128xf32>
    %cst_121 = arith.constant dense<0.000000e+00> : vector<1xf32>
    %238 = vector.multi_reduction <add>, %237, %cst_121 [1, 2] : vector<1x8x128xf32> to vector<1xf32>
    %239 = vector.shape_cast %238 : vector<1xf32> to vector<1x1x1xf32>
    %240 = vector.extract %239[0, 0, 0] : f32 from vector<1x1x1xf32>
    %241 = arith.addf %235, %240 : f32
    %c2_122 = arith.constant 2 : index
    %c7_123 = arith.constant 7 : index
    %242 = memref.load %arg4[%c2_122, %c7_123] : memref<3x9xf32, #tpu.memory_space<smem>>
    memref.store %241, %arg4[%c2_122, %c7_123] : memref<3x9xf32, #tpu.memory_space<smem>>
    %c8 = arith.constant 8 : index
    %243 = memref.load %arg1[%c8] : memref<9xf32, #tpu.memory_space<smem>>
    %244 = vector.broadcast %243 : f32 to vector<8x128xf32>
    %245 = arith.cmpf ogt, %3, %244 : vector<8x128xf32>
    %246 = arith.extui %245 : vector<8x128xi1> to vector<8x128xi32>
    %247 = arith.sitofp %246 : vector<8x128xi32> to vector<8x128xf32>
    %248 = arith.mulf %247, %16 : vector<8x128xf32>
    %c0_124 = arith.constant 0 : index
    %c8_125 = arith.constant 8 : index
    %249 = memref.load %arg4[%c0_124, %c8_125] : memref<3x9xf32, #tpu.memory_space<smem>>
    %250 = vector.shape_cast %248 : vector<8x128xf32> to vector<1x8x128xf32>
    %cst_126 = arith.constant dense<0.000000e+00> : vector<1xf32>
    %251 = vector.multi_reduction <add>, %250, %cst_126 [1, 2] : vector<1x8x128xf32> to vector<1xf32>
    %252 = vector.shape_cast %251 : vector<1xf32> to vector<1x1x1xf32>
    %253 = vector.extract %252[0, 0, 0] : f32 from vector<1x1x1xf32>
    %254 = arith.addf %249, %253 : f32
    %c0_127 = arith.constant 0 : index
    %c8_128 = arith.constant 8 : index
    %255 = memref.load %arg4[%c0_127, %c8_128] : memref<3x9xf32, #tpu.memory_space<smem>>
    memref.store %254, %arg4[%c0_127, %c8_128] : memref<3x9xf32, #tpu.memory_space<smem>>
    %c1_129 = arith.constant 1 : index
    %c8_130 = arith.constant 8 : index
    %256 = memref.load %arg4[%c1_129, %c8_130] : memref<3x9xf32, #tpu.memory_space<smem>>
    %257 = arith.mulf %248, %3 : vector<8x128xf32>
    %258 = vector.shape_cast %257 : vector<8x128xf32> to vector<1x8x128xf32>
    %cst_131 = arith.constant dense<0.000000e+00> : vector<1xf32>
    %259 = vector.multi_reduction <add>, %258, %cst_131 [1, 2] : vector<1x8x128xf32> to vector<1xf32>
    %260 = vector.shape_cast %259 : vector<1xf32> to vector<1x1x1xf32>
    %261 = vector.extract %260[0, 0, 0] : f32 from vector<1x1x1xf32>
    %262 = arith.addf %256, %261 : f32
    %c1_132 = arith.constant 1 : index
    %c8_133 = arith.constant 8 : index
    %263 = memref.load %arg4[%c1_132, %c8_133] : memref<3x9xf32, #tpu.memory_space<smem>>
    memref.store %262, %arg4[%c1_132, %c8_133] : memref<3x9xf32, #tpu.memory_space<smem>>
    %c2_134 = arith.constant 2 : index
    %c8_135 = arith.constant 8 : index
    %264 = memref.load %arg4[%c2_134, %c8_135] : memref<3x9xf32, #tpu.memory_space<smem>>
    %265 = arith.mulf %248, %4 : vector<8x128xf32>
    %266 = vector.shape_cast %265 : vector<8x128xf32> to vector<1x8x128xf32>
    %cst_136 = arith.constant dense<0.000000e+00> : vector<1xf32>
    %267 = vector.multi_reduction <add>, %266, %cst_136 [1, 2] : vector<1x8x128xf32> to vector<1xf32>
    %268 = vector.shape_cast %267 : vector<1xf32> to vector<1x1x1xf32>
    %269 = vector.extract %268[0, 0, 0] : f32 from vector<1x1x1xf32>
    %270 = arith.addf %264, %269 : f32
    %c2_137 = arith.constant 2 : index
    %c8_138 = arith.constant 8 : index
    %271 = memref.load %arg4[%c2_137, %c8_138] : memref<3x9xf32, #tpu.memory_space<smem>>
    memref.store %270, %arg4[%c2_137, %c8_138] : memref<3x9xf32, #tpu.memory_space<smem>>
    return
  }
  func.func @transform_0(%arg0: i32) -> i32 {
    %c0_i32 = arith.constant 0 : i32
    %c0_i32_0 = arith.constant 0 : i32
    return %c0_i32 : i32
  }
  func.func @transform_1(%arg0: i32) -> (i32, i32) {
    %c0_i32 = arith.constant 0 : i32
    %c0_i32_0 = arith.constant 0 : i32
    return %arg0, %c0_i32 : i32, i32
  }
  func.func @transform_2(%arg0: i32) -> (i32, i32) {
    %c0_i32 = arith.constant 0 : i32
    %c0_i32_0 = arith.constant 0 : i32
    return %arg0, %c0_i32 : i32, i32
  }
  func.func @transform_3(%arg0: i32) -> (i32, i32) {
    %c0_i32 = arith.constant 0 : i32
    %c0_i32_0 = arith.constant 0 : i32
    %c0_i32_1 = arith.constant 0 : i32
    return %c0_i32, %c0_i32_0 : i32, i32
  }
}

</mosaic_0001>

<bundles_post_ra>
// kernel: tpu_custom_call.1
= control target key start
LH: loop header
LB: loop body
LE: loop exit
PB: predicated region body
PF: predicated region fallthrough
CT: control target
= control target key end

     0   :  { %8 = vsyncpa [#allocation4], 0  ;;  %s856_s0 = inlined_call_operand.hbm [shape: f32[9], index: 0, kind: input, shape index: {}]   ;;  %s857_s1 = inlined_call_operand.hbm [shape: f32[8,128], index: 1, kind: input, shape index: {}]   ;;  %s858_s2 = inlined_call_operand.hbm [shape: f32[8,128], index: 2, kind: input, shape index: {}]   ;;  %s859_s3 = inlined_call_operand.hbm [shape: f32[3,9], index: 3, kind: output, shape index: {}]  }
   0x1   :  { %9 = vsyncpa [#allocation3], 0 }
   0x2   :  { %10 = vsyncpa [#allocation8], 0 }
   0x3   :  { %11 = vsyncpa [#allocation5], 0  ;;  %s650_s14 = scalar_lea.hbm %s856_s0, 16 }
   0x4   :  { %p651_p0 = scmp.ne.s32.totalorder %s856_s0, %s650_s14  ;;  %p654_p1 = scmp.lt.u32.totalorder %s650_s14, %s856_s0 }
   0x6   :  { %p656_p2 = pnand %p654_p1, %p651_p0 }
   0x8   :  { %659 = shalt.err (!%p656_p2)
}
   0x9   :  { %s730_s19 = smov [#allocation2]   ;;  %s731_s22 = smov [#allocation6]  }
   0xa   :  { %19 = dma.hbm_to_smem %s856_s0, 16, %s730_s19, [#allocation4]  }
   0xb   :  { %s26_s23 = sshll.u32 %s731_s22, 4  ;;  %s732_s24 = smov [#allocation7]   ;;  %s27_s23 = int_to_ptr.vmem [resolvable:$true] %s26_s23 }
   0xc   :  { %s36_s25 = sshll.u32 %s732_s24, 4  ;;  %s660_s28 = scalar_lea.hbm %s857_s1, 128  ;;  %s37_s25 = int_to_ptr.vmem [resolvable:$true] %s36_s25 }
   0xd   :  { %p661_p3 = scmp.ne.s32.totalorder %s857_s1, %s660_s28  ;;  %p664_p4 = scmp.lt.u32.totalorder %s660_s28, %s857_s1 }
   0xf   :  { %p666_p5 = pnand %p664_p4, %p661_p3 }
  0x11   :  { %669 = shalt.err (!%p666_p5)
}
  0x12   :  { %s670_s0 = scalar_lea.vmem %s27_s23, 128  ;;  %p675_p7 = scmp.lt.s32.totalorder %s27_s23, %s27_s23 }
  0x13   :  { %p671_p6 = scmp.ne.s32.totalorder %s27_s23, %s670_s0  ;;  %p676_p8 = scmp.lt.s32.totalorder %s670_s0, %s670_s0 }
  0x15   :  { %p677_p9 = por %p676_p8, %p675_p7 }
  0x17   :  { %p678_p10 = pnand %p677_p9, %p671_p6 }
  0x19   :  { %681 = shalt.err (!%p678_p10)
}
  0x1a   :  { %29 = dma.hbm_to_vmem [thread:$0]  %s857_s1, 128, %s27_s23, [#allocation3]  }
  0x1b   :  { %s682_s10 = scalar_lea.hbm %s858_s2, 128 }
  0x1c   :  { %p683_p11 = scmp.ne.s32.totalorder %s858_s2, %s682_s10  ;;  %p686_p12 = scmp.lt.u32.totalorder %s682_s10, %s858_s2 }
  0x1e   :  { %p688_p13 = pnand %p686_p12, %p683_p11 }
  0x20   :  { %691 = shalt.err (!%p688_p13)
}
  0x21   :  { %s692_s15 = scalar_lea.vmem %s37_s25, 128  ;;  %p697_p1 = scmp.lt.s32.totalorder %s37_s25, %s37_s25 }
  0x22   :  { %p693_p0 = scmp.ne.s32.totalorder %s37_s25, %s692_s15  ;;  %p698_p2 = scmp.lt.s32.totalorder %s692_s15, %s692_s15 }
  0x24   :  { %p699_p3 = por %p698_p2, %p697_p1 }
  0x26   :  { %p700_p4 = pnand %p699_p3, %p693_p0 }
  0x28   :  { %703 = shalt.err (!%p700_p4)
}
  0x29   :  { %39 = dma.hbm_to_vmem [thread:$0]  %s858_s2, 128, %s37_s25, [#allocation8]  }
  0x2a   :  { %718 = dma.done.wait [#allocation4], 16  }
  0x2b   :  { %719 = vsyncadd [#allocation4], 4294967280 }
  0x2c   :  { %720 = dma.done.wait [#allocation3], 128  }
  0x2d   :  { %721 = vsyncadd [#allocation3], 4294967168 }
  0x2e   :  { %722 = dma.done.wait [#allocation8], 128  }
  0x2f   :  { %723 = vsyncadd [#allocation8], 4294967168 }
  0x30   :  { %49 = sfence }
  0x31   :  { %s726_s17 = smov 0  }
  0x32 LB: > { %s62_s18 = sshra.s32 %s728_s17, 7  ;;  %s60_s19 = scalar_lea.smem [#allocation9], %s728_s17  ;;  %s728_s17 = sphi %s726_s17, %s59_s17  }
  0x33   : > { %s733_s20 = smov 0.0   ;;  %s67_s21 = sand.u32 127, %s728_s17 }
  0x34   : > { %61 = sst [smem:[%s60_s19]] %s733_s20  ;;  %s537_s22 = sshll.u32 %s62_s18, 7 }
  0x35   : > { %s525_s23 = sadd.s32 %s537_s22, %s67_s21  ;;  %s59_s17 = sadd.s32 1, %s728_s17  }
  0x36   : > { %s526_s24 = scalar_lea.smem [#allocation9], %s525_s23  ;;  %p56_p5 = scmp.ge.s32.totalorder %s59_s17, 9  }
  0x37   : > { %s527_s2 = scalar_lea.smem %s526_s24, 128 [#allocation9]  ;;  %s531_s25 = scalar_lea.smem %s526_s24, 256 [#allocation9]  ;;  %v78_v0 = vlaneseq (%p56_p5)  ;;  %v792_v4 = vld [vmem:[#allocation6] sm:$0xff] (%p56_p5)  ;;  %v794_v7 = vld [vmem:[#allocation7] sm:$0xff] (%p56_p5)  ;;  %v734_v9 = vmov (%p56_p5), 0.0  }
  0x38   : > { %70 = sst [smem:[%s527_s2]] %s733_s20  ;;  %58 = sbr.rel (!%p56_p5) target bundleno = 50 (0x32), region = 85 }
  0x39   : > { %75 = sst [smem:[%s531_s25]] %s733_s20  ;;  %v79_v1 = vshrl.u32 (%p56_p5), %v78_v0, 7  ;;  %v81_v2 = vand.u32 (%p56_p5), 127, %v78_v0 }
  0x3a   :  { %s542_s26 = sld [smem:[#allocation2 + $0x1]] (%p56_p5)  ;;  %s547_s27 = sld [smem:[#allocation2 + $0x2]] (%p56_p5) }
  0x3b   :  { %v83_v3 = vmul.u32 (%p56_p5), 128, %v79_v1  ;;  %s552_s28 = sld [smem:[#allocation2 + $0x3]] (%p56_p5)  ;;  %s557_s29 = sld [smem:[#allocation2 + $0x4]] (%p56_p5) }
  0x3c   :  { %s562_s30 = sld [smem:[#allocation2 + $0x5]] (%p56_p5)  ;;  %s567_s4 = sld [smem:[#allocation2 + $0x6]] (%p56_p5) }
  0x3d   :  { %v86_v5 = vadd.s32 (%p56_p5), %v83_v3, %v81_v2  ;;  %s572_s5 = sld [smem:[#allocation2 + $0x7]] (%p56_p5)  ;;  %s577_s0 = sld [smem:[#allocation2 + $0x8]] (%p56_p5) }
  0x3e   :  { %s90_s6 = sld [smem:[#allocation9]] (%p56_p5)  ;;  %s544_s11 = sld [smem:[#allocation9 + $0x1]] (%p56_p5) }
  0x3f   :  { %vm87_vm1 = vcmp.lt.s32.totalorder %v86_v5, 400  ;;  %s540_s7 = sld [smem:[#allocation9 + $0x80]]  ;;  %s545_s12 = sld [smem:[#allocation9 + $0x81]] }
  0x40   :  { %v132_v6 = vstv %s542_s26  ;;  %v179_v8 = vstv %s547_s27  ;;  %v799_v10 = vsel %vm87_vm1, 1.0, %v734_v9  ;;  %s541_s8 = sld [smem:[#allocation9 + $0x100]]  ;;  %s546_s14 = sld [smem:[#allocation9 + $0x101]] }
  0x41   :  { %vm133_vm0 = vcmp.gt.f32.partialorder %v792_v4, %v132_v6  ;;  %vm180_vm2 = vcmp.gt.f32.partialorder %v792_v4, %v179_v8  ;;  %91 = vadd.xlane.f32.xlu0 %v799_v10  ;;  %v118_v12 = vmul.f32 %v799_v10, %v794_v7  ;;  %v104_v13 = vmul.f32 %v799_v10, %v792_v4  ;;  %s549_s18 = sld [smem:[#allocation9 + $0x2]]  ;;  %s554_s22 = sld [smem:[#allocation9 + $0x3]] }
  0x42   :  { %v543_v11 = vsel %vm133_vm0, 1.0, %v734_v9  ;;  %v548_v14 = vsel %vm180_vm2, 1.0, %v734_v9  ;;  %v226_v16 = vstv %s552_s28  ;;  %v273_v21 = vstv %s557_s29  ;;  %s550_s20 = sld [smem:[#allocation9 + $0x82]]  ;;  %s555_s28 = sld [smem:[#allocation9 + $0x83]] }
  0x43   :  { %119 = vadd.xlane.f32.xlu1 %v118_v12  ;;  %v136_v15 = vmul.f32 %v543_v11, %v799_v10  ;;  %v183_v17 = vmul.f32 %v548_v14, %v799_v10  ;;  %vm227_vm3 = vcmp.gt.f32.partialorder %v792_v4, %v226_v16  ;;  %vm274_vm4 = vcmp.gt.f32.partialorder %v792_v4, %v273_v21  ;;  %s551_s21 = sld [smem:[#allocation9 + $0x102]] }
  0x44   :  { %v553_v20 = vsel %vm227_vm3, 1.0, %v734_v9  ;;  %v558_v25 = vsel %vm274_vm4, 1.0, %v734_v9  ;;  %v320_v26 = vstv %s562_s30  ;;  %v367_v31 = vstv %s567_s4  ;;  %s556_s30 = sld [smem:[#allocation9 + $0x103]] }
  0x45   :  { %105 = vadd.xlane.f32.xlu0 %v104_v13  ;;  %v165_v18 = vmul.f32 %v136_v15, %v794_v7  ;;  %v151_v19 = vmul.f32 %v136_v15, %v792_v4  ;;  %v198_v22 = vmul.f32 %v183_v17, %v792_v4  ;;  %v212_v23 = vmul.f32 %v183_v17, %v794_v7 }
  0x46   :  { %v230_v24 = vmul.f32 %v553_v20, %v799_v10  ;;  %v277_v29 = vmul.f32 %v558_v25, %v799_v10  ;;  %vm321_vm5 = vcmp.gt.f32.partialorder %v792_v4, %v320_v26  ;;  %vm368_vm6 = vcmp.gt.f32.partialorder %v792_v4, %v367_v31 }
  0x47   :  { %138 = vadd.xlane.f32.xlu1 %v136_v15  ;;  %v563_v30 = vsel %vm321_vm5, 1.0, %v734_v9  ;;  %v568_v35 = vsel %vm368_vm6, 1.0, %v734_v9  ;;  %v414_v36 = vstv %s572_s5  ;;  %v461_v41 = vstv %s577_s0 }
  0x48   :  { %v245_v27 = vmul.f32 %v230_v24, %v792_v4  ;;  %v259_v28 = vmul.f32 %v230_v24, %v794_v7  ;;  %v292_v32 = vmul.f32 %v277_v29, %v792_v4  ;;  %v306_v33 = vmul.f32 %v277_v29, %v794_v7 }
  0x49   :  { %185 = vadd.xlane.f32.xlu0 %v183_v17  ;;  %v324_v34 = vmul.f32 %v563_v30, %v799_v10  ;;  %v371_v39 = vmul.f32 %v568_v35, %v799_v10  ;;  %vm415_vm7 = vcmp.gt.f32.partialorder %v792_v4, %v414_v36  ;;  %vm462_vm8 = vcmp.gt.f32.partialorder %v792_v4, %v461_v41 }
  0x4a   :  { %v573_v40 = vsel %vm415_vm7, 1.0, %v734_v9  ;;  %v578_v45 = vsel %vm462_vm8, 1.0, %v734_v9 }
  0x4b   :  { %166 = vadd.xlane.f32.xlu1 %v165_v18  ;;  %v339_v37 = vmul.f32 %v324_v34, %v792_v4  ;;  %v353_v38 = vmul.f32 %v324_v34, %v794_v7  ;;  %v386_v42 = vmul.f32 %v371_v39, %v792_v4  ;;  %v400_v43 = vmul.f32 %v371_v39, %v794_v7 }
  0x4c   :  { %v418_v44 = vmul.f32 %v573_v40, %v799_v10  ;;  %v465_v48 = vmul.f32 %v578_v45, %v799_v10 }
  0x4d   :  { %152 = vadd.xlane.f32.xlu0 %v151_v19 }
  0x4e   :  { %v433_v46 = vmul.f32 %v418_v44, %v792_v4  ;;  %v447_v47 = vmul.f32 %v418_v44, %v794_v7  ;;  %v480_v49 = vmul.f32 %v465_v48, %v792_v4  ;;  %v494_v50 = vmul.f32 %v465_v48, %v794_v7 }
  0x4f   :  { %199 = vadd.xlane.f32.xlu1 %v198_v22 }
  0x51   :  { %213 = vadd.xlane.f32.xlu0 %v212_v23 }
  0x53   :  { %232 = vadd.xlane.f32.xlu1 %v230_v24 }
  0x55   :  { %246 = vadd.xlane.f32.xlu0 %v245_v27 }
  0x57   :  { %260 = vadd.xlane.f32.xlu1 %v259_v28 }
  0x59   :  { %279 = vadd.xlane.f32.xlu0 %v277_v29 }
  0x5b   :  { %293 = vadd.xlane.f32.xlu1 %v292_v32 }
  0x5d   :  { %307 = vadd.xlane.f32.xlu0 %v306_v33 }
  0x5f   :  { %326 = vadd.xlane.f32.xlu1 %v324_v34 }
  0x61   :  { %340 = vadd.xlane.f32.xlu0 %v339_v37 }
  0x63   :  { %354 = vadd.xlane.f32.xlu1 %v353_v38 }
  0x65   :  { %373 = vadd.xlane.f32.xlu0 %v371_v39 }
  0x67   :  { %387 = vadd.xlane.f32.xlu1 %v386_v42 }
  0x69   :  { %401 = vadd.xlane.f32.xlu0 %v400_v43 }
  0x6b   :  { %420 = vadd.xlane.f32.xlu1 %v418_v44 }
  0x6d   :  { %434 = vadd.xlane.f32.xlu0 %v433_v46 }
  0x6f   :  { %448 = vadd.xlane.f32.xlu1 %v447_v47 }
  0x71   :  { %467 = vadd.xlane.f32.xlu0 %v465_v48 }
  0x73   :  { %481 = vadd.xlane.f32.xlu1 %v480_v49 }
  0x75   :  { %495 = vadd.xlane.f32.xlu0 %v494_v50 }
  0xce   :  { %v92_v51 = vpop.xlane.xlu0 %91 }
  0xcf   :  { %v93_v52 = vrot.slane %v92_v51, 4 }
  0xd0   :  { %v120_v53 = vpop.xlane.xlu1 %119 }
  0xd1   :  { %v94_v54 = vadd.f32 %v93_v52, %v92_v51  ;;  %v121_v55 = vrot.slane %v120_v53, 4 }
  0xd2   :  { %v106_v56 = vpop.xlane.xlu0 %105 }
  0xd3   :  { %v95_v57 = vrot.slane %v94_v54, 2  ;;  %v122_v58 = vadd.f32 %v121_v55, %v120_v53  ;;  %v107_v59 = vrot.slane %v106_v56, 4 }
  0xd4   :  { %v139_v60 = vpop.xlane.xlu1 %138 }
  0xd5   :  { %v123_v61 = vrot.slane %v122_v58, 2  ;;  %v108_v62 = vadd.f32 %v107_v59, %v106_v56  ;;  %v140_v63 = vrot.slane %v139_v60, 4  ;;  %v96_v0 = vadd.f32 %v95_v57, %v94_v54 }
  0xd6   :  { %v186_v1 = vpop.xlane.xlu0 %185 }
  0xd7   :  { %v109_v2 = vrot.slane %v108_v62, 2  ;;  %v141_v3 = vadd.f32 %v140_v63, %v139_v60  ;;  %v187_v4 = vrot.slane %v186_v1, 4  ;;  %v97_v5 = vrot.slane %v96_v0, 1 }
  0xd8   :  { %v167_v6 = vpop.xlane.xlu1 %166  ;;  %v124_v7 = vadd.f32 %v123_v61, %v122_v58 }
  0xd9   :  { %v142_v8 = vrot.slane %v141_v3, 2  ;;  %v188_v9 = vadd.f32 %v187_v4, %v186_v1  ;;  %v168_v10 = vrot.slane %v167_v6, 4  ;;  %v98_v11 = vadd.f32 %v97_v5, %v96_v0 }
  0xda   :  { %v153_v12 = vpop.xlane.xlu0 %152  ;;  %v110_v13 = vadd.f32 %v109_v2, %v108_v62  ;;  %v125_v14 = vrot.slane %v124_v7, 1 }
  0xdb   :  { %v189_v15 = vrot.slane %v188_v9, 2  ;;  %v169_v16 = vadd.f32 %v168_v10, %v167_v6  ;;  %v154_v17 = vrot.slane %v153_v12, 4  ;;  %582 = vpush %v98_v11  ;;  %v143_v18 = vadd.f32 %v142_v8, %v141_v3 }
  0xdc   :  { %v200_v19 = vpop.xlane.xlu1 %199  ;;  %v111_v20 = vrot.slane %v110_v13, 1  ;;  %v126_v27 = vadd.f32 %v125_v14, %v124_v7 }
  0xdd   :  { %v170_v21 = vrot.slane %v169_v16, 2  ;;  %v155_v22 = vadd.f32 %v154_v17, %v153_v12  ;;  %v201_v23 = vrot.slane %v200_v19, 4  ;;  %v144_v24 = vrot.slane %v143_v18, 1 }
  0xde   :  { %v214_v25 = vpop.xlane.xlu0 %213  ;;  %v112_v26 = vadd.f32 %v111_v20, %v110_v13  ;;  %v190_v28 = vadd.f32 %v189_v15, %v188_v9 }
  0xdf   :  { %v156_v29 = vrot.slane %v155_v22, 2  ;;  %v202_v30 = vadd.f32 %v201_v23, %v200_v19  ;;  %v215_v31 = vrot.slane %v214_v25, 4  ;;  %v145_v32 = vadd.f32 %v144_v24, %v143_v18 }
  0xe0   :  { %584 = vpush %v112_v26  ;;  %v233_v33 = vpop.xlane.xlu1 %232  ;;  %v171_v34 = vadd.f32 %v170_v21, %v169_v16  ;;  %v191_v41 = vrot.slane %v190_v28, 1 }
  0xe1   :  { %v203_v35 = vrot.slane %v202_v30, 2  ;;  %v216_v36 = vadd.f32 %v215_v31, %v214_v25  ;;  %586 = vpush %v126_v27  ;;  %v234_v37 = vrot.slane %v233_v33, 4  ;;  %v157_v38 = vadd.f32 %v156_v29, %v155_v22 }
  0xe2   :  { %588 = vpush %v145_v32  ;;  %v247_v39 = vpop.xlane.xlu0 %246  ;;  %v172_v40 = vrot.slane %v171_v34, 1  ;;  %v192_v54 = vadd.f32 %v191_v41, %v190_v28 }
  0xe3   :  { %v217_v42 = vrot.slane %v216_v36, 2  ;;  %v235_v43 = vadd.f32 %v234_v37, %v233_v33  ;;  %v248_v44 = vrot.slane %v247_v39, 4  ;;  %v158_v45 = vrot.slane %v157_v38, 1 }
  0xe4   :  { %v261_v46 = vpop.xlane.xlu1 %260  ;;  %v204_v47 = vadd.f32 %v203_v35, %v202_v30  ;;  %v173_v53 = vadd.f32 %v172_v40, %v171_v34 }
  0xe5   :  { %v236_v48 = vrot.slane %v235_v43, 2  ;;  %v249_v49 = vadd.f32 %v248_v44, %v247_v39  ;;  %v262_v50 = vrot.slane %v261_v46, 4  ;;  %v159_v51 = vadd.f32 %v158_v45, %v157_v38 }
  0xe6   :  { %v280_v52 = vpop.xlane.xlu0 %279  ;;  %v205_v55 = vrot.slane %v204_v47, 1  ;;  %v218_v56 = vadd.f32 %v217_v42, %v216_v36 }
  0xe7   :  { %v250_v57 = vrot.slane %v249_v49, 2  ;;  %v263_v58 = vadd.f32 %v262_v50, %v261_v46  ;;  %v281_v59 = vrot.slane %v280_v52, 4  ;;  %590 = vpush %v159_v51  ;;  %v237_v60 = vadd.f32 %v236_v48, %v235_v43 }
  0xe8   :  { %592 = vpush %v173_v53  ;;  %v294_v61 = vpop.xlane.xlu1 %293  ;;  %v206_v62 = vadd.f32 %v205_v55, %v204_v47  ;;  %v219_v63 = vrot.slane %v218_v56, 1 }
  0xe9   :  { %v264_v0 = vrot.slane %v263_v58, 2  ;;  %v282_v1 = vadd.f32 %v281_v59, %v280_v52  ;;  %594 = vpush %v192_v54  ;;  %v295_v2 = vrot.slane %v294_v61, 4  ;;  %v238_v3 = vrot.slane %v237_v60, 1 }
  0xea   :  { %596 = vpush %v206_v62  ;;  %v308_v4 = vpop.xlane.xlu0 %307  ;;  %v220_v5 = vadd.f32 %v219_v63, %v218_v56  ;;  %v251_v6 = vadd.f32 %v250_v57, %v249_v49 }
  0xeb   :  { %v283_v7 = vrot.slane %v282_v1, 2  ;;  %v296_v8 = vadd.f32 %v295_v2, %v294_v61  ;;  %v309_v9 = vrot.slane %v308_v4, 4  ;;  %v239_v10 = vadd.f32 %v238_v3, %v237_v60 }
  0xec   :  { %598 = vpush %v220_v5  ;;  %v327_v11 = vpop.xlane.xlu1 %326  ;;  %v252_v12 = vrot.slane %v251_v6, 1  ;;  %v265_v13 = vadd.f32 %v264_v0, %v263_v58 }
  0xed   :  { %v297_v14 = vrot.slane %v296_v8, 2  ;;  %v310_v15 = vadd.f32 %v309_v9, %v308_v4  ;;  %v328_v16 = vrot.slane %v327_v11, 4  ;;  %600 = vpush %v239_v10  ;;  %v284_v17 = vadd.f32 %v283_v7, %v282_v1 }
  0xee   :  { %v341_v18 = vpop.xlane.xlu0 %340  ;;  %v253_v19 = vadd.f32 %v252_v12, %v251_v6  ;;  %v266_v20 = vrot.slane %v265_v13, 1 }
  0xef   :  { %v311_v21 = vrot.slane %v310_v15, 2  ;;  %v329_v22 = vadd.f32 %v328_v16, %v327_v11  ;;  %v342_v23 = vrot.slane %v341_v18, 4  ;;  %v285_v24 = vrot.slane %v284_v17, 1 }
  0xf0   :  { %602 = vpush %v253_v19  ;;  %v355_v25 = vpop.xlane.xlu1 %354  ;;  %v267_v26 = vadd.f32 %v266_v20, %v265_v13  ;;  %v298_v27 = vadd.f32 %v297_v14, %v296_v8 }
  0xf1   :  { %v330_v28 = vrot.slane %v329_v22, 2  ;;  %v343_v29 = vadd.f32 %v342_v23, %v341_v18  ;;  %v356_v30 = vrot.slane %v355_v25, 4  ;;  %v286_v31 = vadd.f32 %v285_v24, %v284_v17 }
  0xf2   :  { %604 = vpush %v267_v26  ;;  %v374_v32 = vpop.xlane.xlu0 %373  ;;  %v299_v33 = vrot.slane %v298_v27, 1  ;;  %v312_v34 = vadd.f32 %v311_v21, %v310_v15 }
  0xf3   :  { %v344_v35 = vrot.slane %v343_v29, 2  ;;  %v357_v36 = vadd.f32 %v356_v30, %v355_v25  ;;  %v375_v37 = vrot.slane %v374_v32, 4  ;;  %606 = vpush %v286_v31  ;;  %v331_v38 = vadd.f32 %v330_v28, %v329_v22 }
  0xf4   :  { %v388_v39 = vpop.xlane.xlu1 %387  ;;  %v300_v40 = vadd.f32 %v299_v33, %v298_v27  ;;  %v313_v41 = vrot.slane %v312_v34, 1 }
  0xf5   :  { %v358_v42 = vrot.slane %v357_v36, 2  ;;  %v376_v43 = vadd.f32 %v375_v37, %v374_v32  ;;  %v389_v44 = vrot.slane %v388_v39, 4  ;;  %v332_v45 = vrot.slane %v331_v38, 1 }
  0xf6   :  { %608 = vpush %v300_v40  ;;  %v402_v46 = vpop.xlane.xlu0 %401  ;;  %v314_v47 = vadd.f32 %v313_v41, %v312_v34  ;;  %v345_v48 = vadd.f32 %v344_v35, %v343_v29 }
  0xf7   :  { %v377_v49 = vrot.slane %v376_v43, 2  ;;  %v390_v50 = vadd.f32 %v389_v44, %v388_v39  ;;  %v403_v51 = vrot.slane %v402_v46, 4  ;;  %v333_v52 = vadd.f32 %v332_v45, %v331_v38 }
  0xf8   :  { %610 = vpush %v314_v47  ;;  %v421_v53 = vpop.xlane.xlu1 %420  ;;  %v346_v54 = vrot.slane %v345_v48, 1  ;;  %v359_v55 = vadd.f32 %v358_v42, %v357_v36 }
  0xf9   :  { %v391_v56 = vrot.slane %v390_v50, 2  ;;  %v404_v57 = vadd.f32 %v403_v51, %v402_v46  ;;  %v422_v58 = vrot.slane %v421_v53, 4  ;;  %612 = vpush %v333_v52  ;;  %v378_v59 = vadd.f32 %v377_v49, %v376_v43 }
  0xfa   :  { %v435_v60 = vpop.xlane.xlu0 %434  ;;  %v347_v61 = vadd.f32 %v346_v54, %v345_v48  ;;  %v360_v62 = vrot.slane %v359_v55, 1 }
  0xfb   :  { %v405_v63 = vrot.slane %v404_v57, 2  ;;  %v423_v0 = vadd.f32 %v422_v58, %v421_v53  ;;  %v436_v1 = vrot.slane %v435_v60, 4  ;;  %v379_v2 = vrot.slane %v378_v59, 1 }
  0xfc   :  { %614 = vpush %v347_v61  ;;  %v449_v3 = vpop.xlane.xlu1 %448  ;;  %v361_v4 = vadd.f32 %v360_v62, %v359_v55  ;;  %v392_v5 = vadd.f32 %v391_v56, %v390_v50 }
  0xfd   :  { %v424_v6 = vrot.slane %v423_v0, 2  ;;  %v437_v7 = vadd.f32 %v436_v1, %v435_v60  ;;  %v450_v8 = vrot.slane %v449_v3, 4  ;;  %v380_v9 = vadd.f32 %v379_v2, %v378_v59 }
  0xfe   :  { %616 = vpush %v361_v4  ;;  %v468_v10 = vpop.xlane.xlu0 %467  ;;  %v393_v11 = vrot.slane %v392_v5, 1  ;;  %v406_v12 = vadd.f32 %v405_v63, %v404_v57 }
  0xff   :  { %v438_v13 = vrot.slane %v437_v7, 2  ;;  %v451_v14 = vadd.f32 %v450_v8, %v449_v3  ;;  %v469_v15 = vrot.slane %v468_v10, 4  ;;  %618 = vpush %v380_v9  ;;  %v425_v16 = vadd.f32 %v424_v6, %v423_v0 }
 0x100   :  { %v482_v17 = vpop.xlane.xlu1 %481  ;;  %v394_v18 = vadd.f32 %v393_v11, %v392_v5  ;;  %v407_v19 = vrot.slane %v406_v12, 1 }
 0x101   :  { %v452_v20 = vrot.slane %v451_v14, 2  ;;  %v470_v21 = vadd.f32 %v469_v15, %v468_v10  ;;  %v483_v22 = vrot.slane %v482_v17, 4  ;;  %v426_v23 = vrot.slane %v425_v16, 1 }
 0x102   :  { %620 = vpush %v394_v18  ;;  %v496_v24 = vpop.xlane.xlu0 %495  ;;  %v408_v25 = vadd.f32 %v407_v19, %v406_v12  ;;  %v439_v26 = vadd.f32 %v438_v13, %v437_v7 }
 0x103   :  { %v471_v27 = vrot.slane %v470_v21, 2  ;;  %v484_v28 = vadd.f32 %v483_v22, %v482_v17  ;;  %v497_v29 = vrot.slane %v496_v24, 4  ;;  %v427_v30 = vadd.f32 %v426_v23, %v425_v16 }
 0x104   :  { %622 = vpush %v408_v25  ;;  %v440_v31 = vrot.slane %v439_v26, 1  ;;  %v453_v32 = vadd.f32 %v452_v20, %v451_v14 }
 0x105   :  { %v485_v33 = vrot.slane %v484_v28, 2  ;;  %v498_v34 = vadd.f32 %v497_v29, %v496_v24  ;;  %624 = vpush %v427_v30  ;;  %v472_v35 = vadd.f32 %v471_v27, %v470_v21 }
 0x106   :  { %v441_v36 = vadd.f32 %v440_v31, %v439_v26  ;;  %v454_v37 = vrot.slane %v453_v32, 1 }
 0x107   :  { %v486_v38 = vadd.f32 %v485_v33, %v484_v28  ;;  %v499_v39 = vrot.slane %v498_v34, 2  ;;  %v473_v40 = vrot.slane %v472_v35, 1 }
 0x108   :  { %626 = vpush %v441_v36  ;;  %v455_v41 = vadd.f32 %v454_v37, %v453_v32 }
 0x109   :  { %v500_v42 = vadd.f32 %v499_v39, %v498_v34  ;;  %v474_v43 = vadd.f32 %v473_v40, %v472_v35  ;;  %v487_v44 = vrot.slane %v486_v38, 1 }
 0x10a   :  { %628 = vpush %v455_v41 }
 0x10b   :  { %630 = vpush %v474_v43  ;;  %v488_v45 = vadd.f32 %v487_v44, %v486_v38  ;;  %v501_v46 = vrot.slane %v500_v42, 1 }
 0x10c   :  { %s583_s9 = spop %582 }
 0x10d   :  { %s100_s10 = sadd.f32 %s583_s9, %s90_s6  ;;  %632 = vpush %v488_v45  ;;  %v502_v47 = vadd.f32 %v501_v46, %v500_v42  ;;  %s559_s6 = sld [smem:[#allocation9 + $0x4]] }
 0x10f   :  { %102 = sst [smem:[#allocation9]] %s100_s10  ;;  %634 = vpush %v502_v47 }
 0x111   :  { %s585_s13 = spop %584 }
 0x112   :  { %s114_s15 = sadd.f32 %s585_s13, %s540_s7  ;;  %s587_s1 = spop %586 }
 0x113   :  { %s128_s16 = sadd.f32 %s587_s1, %s541_s8  ;;  %s589_s17 = spop %588 }
 0x114   :  { %116 = sst [smem:[#allocation9 + $0x80]] %s114_s15  ;;  %s560_s8 = sld [smem:[#allocation9 + $0x84]] }
 0x115   :  { %130 = sst [smem:[#allocation9 + $0x100]] %s128_s16 }
 0x116   :  { %s147_s19 = sadd.f32 %s589_s17, %s544_s11  ;;  %s565_s17 = sld [smem:[#allocation9 + $0x85]] }
 0x118   :  { %149 = sst [smem:[#allocation9 + $0x1]] %s147_s19  ;;  %s591_s23 = spop %590 }
 0x119   :  { %s161_s24 = sadd.f32 %s591_s23, %s545_s12  ;;  %s593_s2 = spop %592 }
 0x11a   :  { %s175_s25 = sadd.f32 %s593_s2, %s546_s14  ;;  %s595_s26 = spop %594 }
 0x11b   :  { %163 = sst [smem:[#allocation9 + $0x81]] %s161_s24  ;;  %s597_s27 = spop %596 }
 0x11c   :  { %177 = sst [smem:[#allocation9 + $0x101]] %s175_s25  ;;  %s561_s12 = sld [smem:[#allocation9 + $0x104]] }
 0x11d   :  { %s194_s29 = sadd.f32 %s595_s26, %s549_s18  ;;  %s599_s5 = spop %598 }
 0x11e   :  { %s208_s4 = sadd.f32 %s597_s27, %s550_s20  ;;  %s601_s0 = spop %600 }
 0x11f   :  { %196 = sst [smem:[#allocation9 + $0x2]] %s194_s29  ;;  %s564_s14 = sld [smem:[#allocation9 + $0x5]] }
 0x120   :  { %210 = sst [smem:[#allocation9 + $0x82]] %s208_s4  ;;  %s566_s19 = sld [smem:[#allocation9 + $0x105]] }
 0x121   :  { %s222_s7 = sadd.f32 %s599_s5, %s551_s21  ;;  %s603_s10 = spop %602 }
 0x122   :  { %s241_s9 = sadd.f32 %s601_s0, %s554_s22  ;;  %s569_s22 = sld [smem:[#allocation9 + $0x6]] }
 0x123   :  { %224 = sst [smem:[#allocation9 + $0x102]] %s222_s7  ;;  %s605_s11 = spop %604 }
 0x124   :  { %243 = sst [smem:[#allocation9 + $0x3]] %s241_s9  ;;  %s607_s1 = spop %606 }
 0x125   :  { %s255_s13 = sadd.f32 %s603_s10, %s555_s28  ;;  %s570_s2 = sld [smem:[#allocation9 + $0x86]] }
 0x126   :  { %s269_s15 = sadd.f32 %s605_s11, %s556_s30  ;;  %s571_s28 = sld [smem:[#allocation9 + $0x106]] }
 0x127   :  { %257 = sst [smem:[#allocation9 + $0x83]] %s255_s13  ;;  %s609_s16 = spop %608 }
 0x128   :  { %271 = sst [smem:[#allocation9 + $0x103]] %s269_s15  ;;  %s574_s30 = sld [smem:[#allocation9 + $0x7]] }
 0x129   :  { %s288_s18 = sadd.f32 %s607_s1, %s559_s6  ;;  %s611_s23 = spop %610 }
 0x12a   :  { %s302_s20 = sadd.f32 %s609_s16, %s560_s8  ;;  %s613_s21 = spop %612 }
 0x12b   :  { %290 = sst [smem:[#allocation9 + $0x4]] %s288_s18  ;;  %s575_s6 = sld [smem:[#allocation9 + $0x87]] }
 0x12c   :  { %304 = sst [smem:[#allocation9 + $0x84]] %s302_s20  ;;  %s576_s8 = sld [smem:[#allocation9 + $0x107]] }
 0x12d   :  { %s316_s24 = sadd.f32 %s611_s23, %s561_s12  ;;  %s615_s26 = spop %614 }
 0x12e   :  { %s335_s25 = sadd.f32 %s613_s21, %s564_s14  ;;  %s579_s12 = sld [smem:[#allocation9 + $0x8]] }
 0x12f   :  { %318 = sst [smem:[#allocation9 + $0x104]] %s316_s24  ;;  %s617_s27 = spop %616 }
 0x130   :  { %337 = sst [smem:[#allocation9 + $0x5]] %s335_s25  ;;  %s619_s5 = spop %618 }
 0x131   :  { %s349_s29 = sadd.f32 %s615_s26, %s565_s17  ;;  %s580_s14 = sld [smem:[#allocation9 + $0x88]] }
 0x132   :  { %s363_s4 = sadd.f32 %s617_s27, %s566_s19  ;;  %s581_s18 = sld [smem:[#allocation9 + $0x108]] }
 0x133   :  { %351 = sst [smem:[#allocation9 + $0x85]] %s349_s29  ;;  %s621_s0 = spop %620 }
 0x134   :  { %365 = sst [smem:[#allocation9 + $0x105]] %s363_s4  ;;  %s704_s27 = scalar_lea.hbm %s859_s3, 64 }
 0x135   :  { %s382_s7 = sadd.f32 %s619_s5, %s569_s22  ;;  %s623_s10 = spop %622 }
 0x136   :  { %s396_s9 = sadd.f32 %s621_s0, %s570_s2  ;;  %s625_s11 = spop %624 }
 0x137   :  { %384 = sst [smem:[#allocation9 + $0x6]] %s382_s7  ;;  %p705_p6 = scmp.ne.s32.totalorder %s859_s3, %s704_s27 }
 0x138   :  { %398 = sst [smem:[#allocation9 + $0x86]] %s396_s9  ;;  %p708_p7 = scmp.lt.u32.totalorder %s704_s27, %s859_s3 }
 0x139   :  { %s410_s13 = sadd.f32 %s623_s10, %s571_s28  ;;  %s627_s1 = spop %626 }
 0x13a   :  { %s429_s15 = sadd.f32 %s625_s11, %s574_s30  ;;  %p710_p8 = pnand %p708_p7, %p705_p6 }
 0x13b   :  { %412 = sst [smem:[#allocation9 + $0x106]] %s410_s13  ;;  %s629_s16 = spop %628 }
 0x13c   :  { %431 = sst [smem:[#allocation9 + $0x7]] %s429_s15  ;;  %s631_s20 = spop %630 }
 0x13d   :  { %s443_s17 = sadd.f32 %s627_s1, %s575_s6 }
 0x13e   :  { %s457_s19 = sadd.f32 %s629_s16, %s576_s8  ;;  %s633_s23 = spop %632 }
 0x13f   :  { %445 = sst [smem:[#allocation9 + $0x87]] %s443_s17 }
 0x140   :  { %459 = sst [smem:[#allocation9 + $0x107]] %s457_s19  ;;  %s635_s24 = spop %634 }
 0x141   :  { %s476_s21 = sadd.f32 %s631_s20, %s579_s12 }
 0x142   :  { %s490_s22 = sadd.f32 %s633_s23, %s580_s14 }
 0x143   :  { %478 = sst [smem:[#allocation9 + $0x8]] %s476_s21 }
 0x144   :  { %492 = sst [smem:[#allocation9 + $0x88]] %s490_s22 }
 0x145   :  { %s504_s2 = sadd.f32 %s635_s24, %s581_s18 }
 0x147   :  { %506 = sst [smem:[#allocation9 + $0x108]] %s504_s2 }
 0x148   :  { %713 = shalt.err (!%p710_p8)
}
 0x149   :  { %s735_s5 = smov [#allocation9]  }
 0x14a   :  { %514 = dma.smem_to_hbm %s735_s5, 64, %s859_s3, [#allocation5]  }
 0x14b   :  { %724 = dma.done.wait [#allocation5], 64  }
 0x14c   :  { %725 = vsyncadd [#allocation5], 4294967232 }
 0x14d   :  { %518 = sfence }
 0x14e   :  { %519 = vsyncpa [#allocation3], 1 }
 0x14f   :  { %520 = vsyncpa [#allocation8], 1 }
 0x150   :  { %521 = vsyncpa [#allocation4], 1 }
 0x151   :  { %522 = vsyncpa [#allocation5], 1 }

</bundles_post_ra>
